<compile_context>
chip_gen: v6e
topology: v6e:2x2x1
jax: 0.10.0
libtpu: 0.0.40
codegen_flags: <defaults>
</compile_context>

<pallas_src>
import jax
import jax.numpy as jnp
from jax.experimental import pallas as pl
from jax.experimental.pallas import tpu as pltpu

# Fixed conv weights from the PyTorch module __init__.
_W_R, _W_G, _W_B = 0.299, 0.587, 0.114
_LANE = 128


def _rgb_gray_kernel_dense(x_ref, o_ref):
    # x_ref: VMEM block (Bn, 3, Tr, 128)   o_ref: VMEM block (Bn, 1, Tr, 128)
    # Each channel slice is a dense (Tr, 128) tile (channel is a non-minor dim).
    r = x_ref[:, 0, :, :].astype(jnp.float32)
    g = x_ref[:, 1, :, :].astype(jnp.float32)
    b = x_ref[:, 2, :, :].astype(jnp.float32)
    o_ref[:, 0, :, :] = (_W_R * r + _W_G * g + _W_B * b).astype(o_ref.dtype)


def _rgb_gray_kernel_flat(x_ref, o_ref):
    # Fallback layout: x_ref (Bn, 3, T), o_ref (Bn, 1, T).
    r = x_ref[:, 0, :].astype(jnp.float32)
    g = x_ref[:, 1, :].astype(jnp.float32)
    b = x_ref[:, 2, :].astype(jnp.float32)
    o_ref[:, 0, :] = (_W_R * r + _W_G * g + _W_B * b).astype(o_ref.dtype)


def _compiler_params(block_bytes):
    # Enough room for the double-buffered working set + compiler scratch on all
    # generations; capped at 48 MiB so it leaves headroom on v7x (64 MiB VMEM).
    vmem_limit = int(min(48 << 20, max(32 << 20, 4 * block_bytes)))
    return pltpu.CompilerParams(
        dimension_semantics=("parallel", "parallel"),
        vmem_limit_bytes=vmem_limit,
    )


def rgb_gray(x, *, max_tile_elems=512 * 1024):
    """x: (N, 3, H, W) -> (N, 1, H, W); gray = 0.299 R + 0.587 G + 0.114 B.

    max_tile_elems: per-channel spatial elements per block (multiple of 128).
    Default 512K f32 -> ~16 MiB double-buffered working set (fits all TPU gens
    with the explicit vmem_limit_bytes set below).
    """
    N, C, H, W = x.shape
    assert C == 3, "rgb_gray expects 3 input channels (RGB)"
    HW = H * W
    itemsize = jnp.dtype(x.dtype).itemsize

    if HW % _LANE == 0 and HW > 0:
        # ---------------- dense (sublane-dense) path ----------------
        R = HW // _LANE                       # number of 128-wide spatial rows
        target_rows = max(8, max_tile_elems // _LANE)
        if R >= target_rows:
            Tr, Bn = target_rows, 1           # tile spatial rows, one image/block
        else:
            Tr = R                            # whole image per block
            Bn = max(1, min(N, target_rows // max(R, 1)))
            if N >= 2:                        # keep >=2 batch steps for v7x's 2 TCs
                Bn = min(Bn, -(-N // 2))
        # If everything collapsed into a single grid step, split spatially.
        if (-(-N // Bn)) * (-(-R // Tr)) < 2 and R >= 16:
            Tr = max(8, ((-(-R // 2)) + 7) // 8 * 8)

        xf = x.reshape(N, 3, R, _LANE)        # free metadata reshape (contiguous NCHW)
        grid = (pl.cdiv(N, Bn), pl.cdiv(R, Tr))
        block_bytes = 4 * Bn * Tr * _LANE * itemsize   # 3 input + 1 output channels

        out = pl.pallas_call(
            _rgb_gray_kernel_dense,
            out_shape=jax.ShapeDtypeStruct((N, 1, R, _LANE), x.dtype),
            grid_spec=pltpu.PrefetchScalarGridSpec(
                num_scalar_prefetch=0,
                grid=grid,
                in_specs=[pl.BlockSpec((Bn, 3, Tr, _LANE), lambda b, s: (b, 0, s, 0))],
                out_specs=pl.BlockSpec((Bn, 1, Tr, _LANE), lambda b, s: (b, 0, s, 0)),
            ),
            compiler_params=_compiler_params(block_bytes),
        )(xf)
        return out.reshape(N, 1, H, W)

    # ---------------- fallback path (HW % 128 != 0) ----------------
    # Correct (Pallas masks partial blocks) but sublane-sparse; avoids an extra
    # HBM pad/copy pass for awkward spatial sizes.
    xf = x.reshape(N, 3, HW)
    if HW >= max_tile_elems:
        T, Bn = max_tile_elems, 1
    else:
        T = HW
        Bn = max(1, min(N, max_tile_elems // max(HW, 1)))
        if N >= 2:
            Bn = min(Bn, -(-N // 2))
    grid = (pl.cdiv(N, Bn), pl.cdiv(HW, T))
    block_bytes = 4 * Bn * T * itemsize

    out = pl.pallas_call(
        _rgb_gray_kernel_flat,
        out_shape=jax.ShapeDtypeStruct((N, 1, HW), x.dtype),
        grid_spec=pltpu.PrefetchScalarGridSpec(
            num_scalar_prefetch=0,
            grid=grid,
            in_specs=[pl.BlockSpec((Bn, 3, T), lambda b, s: (b, 0, s))],
            out_specs=pl.BlockSpec((Bn, 1, T), lambda b, s: (b, 0, s)),
        ),
        compiler_params=_compiler_params(block_bytes),
    )(xf)
    return out.reshape(N, 1, H, W)


if __name__ == "__main__":
    w = jnp.array([_W_R, _W_G, _W_B], dtype=jnp.float32)

    def ref_fn(xx):
        # Reference: same weighted channel sum (== F.conv2d with 1x3x1x1 kernel).
        return jnp.einsum("nchw,c->nhw", xx, w)[:, None, :, :]

    # 1) Main small case -> dense path, batch-parallel grid.
    x = jax.random.normal(jax.random.PRNGKey(0), (2, 3, 16, 16), dtype=jnp.float32)
    gray = jax.block_until_ready(rgb_gray(x))
    assert gray.shape == (2, 1, 16, 16), gray.shape
    assert jnp.allclose(gray, ref_fn(x), atol=1e-5, rtol=1e-5)

    # 2) Dense path with spatial-row tiling and a masked partial trailing block.
    x2 = jax.random.normal(jax.random.PRNGKey(1), (2, 3, 44, 128), dtype=jnp.float32)
    g2 = jax.block_until_ready(rgb_gray(x2, max_tile_elems=16 * 128))
    assert jnp.allclose(g2, ref_fn(x2), atol=1e-5, rtol=1e-5)

    # 3) Fallback path (HW % 128 != 0) with lane tiling + masked trailing block.
    x3 = jax.random.normal(jax.random.PRNGKey(2), (1, 3, 100, 60), dtype=jnp.float32)
    g3 = jax.block_until_ready(rgb_gray(x3, max_tile_elems=2048))
    assert jnp.allclose(g3, ref_fn(x3), atol=1e-5, rtol=1e-5)

    print("KERNEL_OK")
</pallas_src>

<mosaic_0001>
module attributes {stable_mosaic.version = 11 : i64} {
  func.func @_rgb_gray_kernel_dense(%arg0: i32, %arg1: i32, %arg2: memref<1x3x2x128xf32, #tpu.memory_space<vmem>>, %arg3: memref<1x1x2x128xf32, #tpu.memory_space<vmem>>) attributes {dimension_semantics = [#tpu.dimension_semantics<parallel>, #tpu.dimension_semantics<parallel>], iteration_bounds = array<i64: 2, 1>, scalar_prefetch = 0 : i64, scratch_operands = 0 : i64, tpu.core_type = #tpu.core_type<tc>, window_params = [{transform_indices = @transform_0, window_bounds = array<i64: 1, 3, 2, 128>}, {transform_indices = @transform_1, window_bounds = array<i64: 1, 1, 2, 128>}]} {
    %c0 = arith.constant 0 : index
    %c0_0 = arith.constant 0 : index
    %c0_1 = arith.constant 0 : index
    %c0_2 = arith.constant 0 : index
    %0 = vector.load %arg2[%c0, %c0_0, %c0_1, %c0_2] : memref<1x3x2x128xf32, #tpu.memory_space<vmem>>, vector<1x1x2x128xf32>
    %1 = vector.shape_cast %0 : vector<1x1x2x128xf32> to vector<1x2x128xf32>
    %c0_3 = arith.constant 0 : index
    %c1 = arith.constant 1 : index
    %c0_4 = arith.constant 0 : index
    %c0_5 = arith.constant 0 : index
    %2 = vector.load %arg2[%c0_3, %c1, %c0_4, %c0_5] : memref<1x3x2x128xf32, #tpu.memory_space<vmem>>, vector<1x1x2x128xf32>
    %3 = vector.shape_cast %2 : vector<1x1x2x128xf32> to vector<1x2x128xf32>
    %c0_6 = arith.constant 0 : index
    %c2 = arith.constant 2 : index
    %c0_7 = arith.constant 0 : index
    %c0_8 = arith.constant 0 : index
    %4 = vector.load %arg2[%c0_6, %c2, %c0_7, %c0_8] : memref<1x3x2x128xf32, #tpu.memory_space<vmem>>, vector<1x1x2x128xf32>
    %5 = vector.shape_cast %4 : vector<1x1x2x128xf32> to vector<1x2x128xf32>
    %cst = arith.constant 2.990000e-01 : f32
    %6 = vector.broadcast %cst : f32 to vector<1x2x128xf32>
    %7 = arith.mulf %6, %1 : vector<1x2x128xf32>
    %cst_9 = arith.constant 5.870000e-01 : f32
    %8 = vector.broadcast %cst_9 : f32 to vector<1x2x128xf32>
    %9 = arith.mulf %8, %3 : vector<1x2x128xf32>
    %10 = arith.addf %7, %9 : vector<1x2x128xf32>
    %cst_10 = arith.constant 1.140000e-01 : f32
    %11 = vector.broadcast %cst_10 : f32 to vector<1x2x128xf32>
    %12 = arith.mulf %11, %5 : vector<1x2x128xf32>
    %13 = arith.addf %10, %12 : vector<1x2x128xf32>
    %c0_11 = arith.constant 0 : index
    %c0_12 = arith.constant 0 : index
    %c0_13 = arith.constant 0 : index
    %c0_14 = arith.constant 0 : index
    %14 = vector.load %arg3[%c0_11, %c0_12, %c0_13, %c0_14] : memref<1x1x2x128xf32, #tpu.memory_space<vmem>>, vector<1x1x2x128xf32>
    %15 = vector.shape_cast %14 : vector<1x1x2x128xf32> to vector<1x2x128xf32>
    %16 = vector.shape_cast %13 : vector<1x2x128xf32> to vector<1x1x2x128xf32>
    tpu.vector_store %arg3[%c0_11, %c0_12, %c0_13, %c0_14], %16 {strides = array<i32>} : memref<1x1x2x128xf32, #tpu.memory_space<vmem>>, vector<1x1x2x128xf32>,
    return
  }
  func.func @transform_0(%arg0: i32, %arg1: i32) -> (i32, i32, i32, i32) {
    %c0_i32 = arith.constant 0 : i32
    %c0_i32_0 = arith.constant 0 : i32
    %c0_i32_1 = arith.constant 0 : i32
    return %arg0, %c0_i32, %arg1, %c0_i32_0 : i32, i32, i32, i32
  }
  func.func @transform_1(%arg0: i32, %arg1: i32) -> (i32, i32, i32, i32) {
    %c0_i32 = arith.constant 0 : i32
    %c0_i32_0 = arith.constant 0 : i32
    %c0_i32_1 = arith.constant 0 : i32
    return %arg0, %c0_i32, %arg1, %c0_i32_0 : i32, i32, i32, i32
  }
}

</mosaic_0001>

<bundles_post_ra>
// kernel: tpu_custom_call.1
= control target key start
LH: loop header
LB: loop body
LE: loop exit
PB: predicated region body
PF: predicated region fallthrough
CT: control target
= control target key end

     0   :  { %6 = vsyncpa [#allocation3], 0  ;;  %s596_s0 = inlined_call_operand.hbm [shape: f32[2,3,2,128], index: 0, kind: input, shape index: {}]   ;;  %s597_s1 = inlined_call_operand.hbm [shape: f32[2,1,2,128], index: 1, kind: output, shape index: {}]  }
   0x1   :  { %8 = vsyncpa [#allocation3 + $0x1], 0 }
   0x2   :  { %9 = vsyncpa [#allocation4], 0 }
   0x3   :  { %11 = vsyncpa [#allocation4 + $0x1], 0  ;;  %s463_s6 = smov 0   ;;  %s465_s7 = smov 0  }
   0x4   :  { %s467_s8 = smov 0   ;;  %s469_s9 = smov 0  }
   0x5   :  { %s471_s10 = smov 0   ;;  %s473_s11 = smov 0  }
   0x6 LB: > { %s259_s12 = sadd.s32 4294967295, %s447_s11   ;;  %s260_s13 = sadd.s32 4294967294, %s447_s11   ;;  %s447_s11 = sphi %s473_s11, %s17_s11   ;;  %s443_s10 = sphi %s471_s10, %s608_s10   ;;  %s439_s9 = sphi %s469_s9, %s607_s9   ;;  %s435_s8 = sphi %s467_s8, %s606_s8   ;;  %s431_s7 = sphi %s465_s7, %s605_s7   ;;  %s427_s6 = sphi %s463_s6, %s604_s6  }
   0x7   : > { %s29_s14 = sadd.s32 1, %s443_s10  ;;  %s38_s15 = sadd.s32 1, %s435_s8 }
   0x8   : > { %p31_p0 = scmp.ge.s32.totalorder %s29_s14, 2  ;;  %p45_p1 = scmp.ne.s32.totalorder %s435_s8, %s431_s7 }
   0x9   : > { %p46_p2 = scmp.eq.s32.totalorder %s447_s11, 0  ;;  %p51_p3 = scmp.ne.s32.totalorder %s431_s7, %s427_s6 }
   0xa   : > { %s610_s14 = smov (%p31_p0, %s29_s14), 0  ;;  %p52_p5 = scmp.eq.s32.totalorder %s259_s12, 0 }
   0xb   : > { %p504_p4 = por %p46_p2, %p45_p1  ;;  %s33_s17 = ssub.s32 %s443_s10, %s610_s14 }
   0xc   : > { %p77_p6 = scmp.eq.s32.totalorder %s259_s12, 1  ;;  %p36_p7 = scmp.eq.s32.totalorder %s33_s17, 0 }
   0xd   : > { %p510_p8 = por %p52_p5, %p51_p3  ;;  %p83_p10 = scmp.eq.s32.totalorder %s260_s13, 1 }
   0xe   : > { %p514_p9 = por %p77_p6, %p45_p1  ;;  %p287_p13 = scmp.lt.s32.totalorder %s447_s11, 2 }
   0xf   : > { %s519_s20 = scalar_select %p36_p7, %s435_s8, %s38_s15  }
  0x10   : > { %p521_p11 = por %p83_p10, %p51_p3  ;;  %s103_s22 = sand.u32 1, %s435_s8  }
  0x11   : > { %s272_s23 = smul.u32 6, %s103_s22  ;;  %p531_p0 = pnand %p287_p13, %p504_p4 }
  0x12   : > { %s273_s24 = smul.u32 96, %s443_s10  ;;  %p264_p1 = scmp.ge.s32.totalorder %s447_s11, 1 }
  0x13   : > { %s107_s29 = scalar_lea.vmem [#allocation2], %s272_s23  ;;  %s104_s2 = scalar_lea.sflag [#allocation3], %s103_s22 }
  0x14   : > { %s114_s28 = scalar_lea.hbm %s596_s0, %s273_s24  ;;  %s115_s30 = sshll.u32 %s107_s29, 4  ;;  %s116_s30 = int_to_ptr.vmem [resolvable:$true] %s115_s30 }
  0x15   : > { %p341_p2 = pneg %p531_p0  ;;  %s352_s3 = scalar_lea.vmem %s116_s30, 96 }
  0x16   : > { %p353_p3 = scmp.ne.s32.totalorder %s116_s30, %s352_s3  ;;  %s449_s4 = smov [#allocation2]  }
  0x17   : > { %s357_s5 = sshll.u32 %s449_s4, 4  ;;  %s358_s5 = int_to_ptr.vmem [resolvable:$false] %s357_s5 }
  0x18   : > { %p355_p5 = pnand %p353_p3, %p341_p2  ;;  %s359_s12 = scalar_lea.vmem %s358_s5, 192 }
  0x19   : > { %p360_p4 = scmp.lt.s32.totalorder %s116_s30, %s358_s5  ;;  %p361_p7 = scmp.lt.s32.totalorder %s359_s12, %s352_s3 }
  0x1a   : > { %p356_p6 = pneg %p355_p5 }
  0x1b   : > { %p362_p10 = por %p361_p7, %p360_p4 }
  0x1d   : > { %p363_p13 = pnand %p362_p10, %p356_p6 }
  0x1f   : > { %366 = shalt.err (!%p363_p13)
}
  0x20   : > { %s450_s13 = smov 32   ;;  %s451_s15 = smov 2  }
  0x21   : > { %282 = dma.hbm_to_vmem [thread:$0]  (!%p531_p0), %s114_s28, 96, %s116_s30, %s104_s2, %s450_s13, %s450_s13, %s451_s15  }
  0x22   : > { %p123_p12 = scmp.lt.s32.totalorder %s447_s11, 3 }
  0x24   : > { %p124_p2 = pnand %p264_p1, %p123_p12 }
  0x25   : > { %s547_s16 = sand.u32 (!%p124_p2), 1, %s431_s7  }
  0x26   : > { %127 = sbr.rel (%p124_p2) target bundleno = 70 (0x46), region = 24  ;;  %s130_s22 = scalar_lea.sflag (!%p124_p2), [#allocation3], %s547_s16 }
  0x27   : > { %s274_s17 = smul.u32 (!%p124_p2), 6, %s547_s16 }
  0x29   : > { %s133_s23 = scalar_lea.vmem (!%p124_p2), [#allocation2], %s274_s17 }
  0x2b   : > { %418 = dma.done.wait (%p510_p8), %s130_s22, 96  }
  0x2c   : > { %420 = vsyncadd (%p510_p8), %s130_s22, 4294967200  ;;  %s265_s24 = sshll.u32 %s547_s16, 1  ;;  %v152_v0 = vld [vmem:[%s133_s23] sm:$0x3]  ;;  %v266_v1 = vld [vmem:[%s133_s23 + $0x2] sm:$0x3] }
  0x2d   : > { %v267_v2 = vld [vmem:[%s133_s23 + $0x4] sm:$0x3]  ;;  %v157_v3 = vmul.f32 0.299, %v152_v0  ;;  %v158_v4 = vmul.f32 0.587, %v266_v1 }
  0x2e   : > { %v160_v5 = vmul.f32 0.114, %v267_v2  ;;  %s151_s25 = scalar_lea.vmem [#allocation5], %s265_s24  ;;  %s269_s27 = sshll.u32 %s439_s9, 5 }
  0x2f   : > { %s178_s26 = sshll.u32 %s151_s25, 4  ;;  %v159_v6 = vadd.f32 %v158_v4, %v157_v3  ;;  %s176_s29 = scalar_lea.hbm %s597_s1, %s269_s27  ;;  %s179_s26 = int_to_ptr.vmem [resolvable:$true] %s178_s26 }
  0x30   : > { %s164_s30 = scalar_lea.sflag [#allocation4], %s547_s16  ;;  %s367_s2 = scalar_lea.vmem %s179_s26, 32 }
  0x31   : > { %v161_v7 = vadd.f32 %v160_v5, %v159_v6  ;;  %p368_p8 = scmp.ne.s32.totalorder %s179_s26, %s367_s2  ;;  %s452_s3 = smov [#allocation5]  }
  0x32   : > { %s371_s4 = sshll.u32 %s452_s3, 4  ;;  %s372_s4 = int_to_ptr.vmem [resolvable:$false] %s371_s4 }
  0x33   : > { %162 = vst [vmem:[%s151_s25] sm:$0x3] %v161_v7  ;;  %p369_p12 = pnand %p368_p8, %p514_p9  ;;  %s373_s5 = scalar_lea.vmem %s372_s4, 64 }
  0x34   : > { %p374_p1 = scmp.lt.s32.totalorder %s179_s26, %s372_s4  ;;  %p375_p3 = scmp.lt.s32.totalorder %s373_s5, %s367_s2 }
  0x35   : > { %p370_p0 = pneg %p369_p12 }
  0x36   : > { %p376_p5 = por %p375_p3, %p374_p1 }
  0x38   : > { %p377_p6 = pnand %p376_p5, %p370_p0 }
  0x3a   : > { %380 = shalt.err (!%p377_p6)
}
  0x3b   : > { %s381_s9 = scalar_lea.hbm %s176_s29, 32  ;;  %s385_s15 = scalar_lea.hbm %s597_s1, 64 }
  0x3c   : > { %p382_p4 = scmp.ne.s32.totalorder %s176_s29, %s381_s9  ;;  %p386_p13 = scmp.lt.s32.totalorder %s176_s29, %s597_s1 }
  0x3d   : > { %p387_p2 = scmp.lt.s32.totalorder %s385_s15, %s381_s9 }
  0x3e   : > { %p383_p7 = pnand %p382_p4, %p514_p9 }
  0x3f   : > { %p388_p8 = por %p387_p2, %p386_p13 }
  0x40   : > { %p384_p10 = pneg %p383_p7 }
  0x42   : > { %p389_p12 = pnand %p388_p8, %p384_p10 }
  0x44   : > { %392 = shalt.err (!%p389_p12)
}
  0x45   : > { %277 = dma.vmem_to_hbm [thread:$0]  (%p514_p9), %s179_s26, 32, %s176_s29, %s164_s30  }
  0x46 PF: > { %s190_s22 = sand.u32 1, %s427_s6   ;;  %p603_p0 = scmp.ge.s32.totalorder %s447_s11, 2 }
  0x47   : > { %s191_s23 = scalar_lea.sflag [#allocation4], %s190_s22 }
  0x48   : > { %p284_p1 = pnand %p603_p0, %p521_p11 }
  0x4a   : > { %p285_p3 = pneg %p284_p1 }
  0x4c   : > { %422 = dma.done.wait (%p285_p3), %s191_s23, 32  }
  0x4d   : > { %424 = vsyncadd (%p285_p3), %s191_s23, 4294967264  ;;  %s17_s11 = sadd.s32 1, %s447_s11   ;;  %s604_s6 = smov %s431_s7 }
  0x4e   : > { %p14_p5 = scmp.ge.s32.totalorder %s17_s11, 4   ;;  %s605_s7 = smov %s435_s8 }
  0x4f   : > { %s606_s8 = smov %s519_s20  ;;  %s607_s9 = smov %s443_s10 }
  0x50   : > { %s608_s10 = smov %s610_s14  ;;  %16 = sbr.rel (!%p14_p5) target bundleno = 6 (0x6), region = 71 }
  0x55   :  { %196 = vsyncpa [#allocation3], 1 }
  0x56   :  { %198 = vsyncpa [#allocation3 + $0x1], 1 }
  0x57   :  { %199 = vsyncpa [#allocation4], 1 }
  0x58   :  { %201 = vsyncpa [#allocation4 + $0x1], 1 }

</bundles_post_ra>
